<compile_context>
chip_gen: v7x
topology: tpu7x:2x2x1
jax: 0.10.0
libtpu: 0.0.40
codegen_flags: <defaults>
</compile_context>

<pallas_src>
import math

import jax
import jax.numpy as jnp
from jax.experimental import pallas as pl
from jax.experimental.pallas import tpu as pltpu


def _round_up(v, m):
    return ((v + m - 1) // m) * m


def _pick_tile(n):
    if n >= 512:
        return 512
    if n >= 256:
        return 256
    return 128


def _divisible_tile(padded, preferred):
    """Largest tile <= preferred (from {512, 256, 128}) dividing `padded` (a mult of 128)."""
    for t in (512, 256, 128):
        if t <= preferred and padded % t == 0:
            return t
    return 128


def _pad_cast(a, shape, dtype):
    """Cast to dtype and zero-pad to `shape`; no-op copies are skipped when possible."""
    a = a.astype(dtype)
    if a.shape == tuple(shape):
        return a
    out = jnp.zeros(shape, dtype)
    return out.at[tuple(slice(0, s) for s in a.shape)].set(a)


def _vmem_limit(block_bytes):
    """Derive the scoped-VMEM limit from the real tile footprint (+headroom), <= 48 MiB."""
    limit = int(block_bytes) * 2 + (8 << 20)
    return max(16 << 20, min(limit, 48 << 20))


# ---------------------------------------------------------------------------
# Pass 1: support = X @ W   (standard tiled matmul, f32 accumulation)
# ---------------------------------------------------------------------------
def _support_kernel(x_ref, w_ref, out_ref, acc_ref):
    k = pl.program_id(2)

    @pl.when(k == 0)
    def _init():
        acc_ref[...] = jnp.zeros_like(acc_ref)

    acc_ref[...] += jnp.dot(x_ref[...], w_ref[...], preferred_element_type=jnp.float32)

    @pl.when(k == pl.num_programs(2) - 1)
    def _finalize():
        out_ref[...] = acc_ref[...].astype(out_ref.dtype)


# ---------------------------------------------------------------------------
# Pass 2: output = adj @ support + bias   (f32 accumulation, f32 bias add)
# ---------------------------------------------------------------------------
def _aggregate_kernel(adj_ref, s_ref, b_ref, out_ref, acc_ref):
    k = pl.program_id(2)

    @pl.when(k == 0)
    def _init():
        acc_ref[...] = jnp.zeros_like(acc_ref)

    acc_ref[...] += jnp.dot(adj_ref[...], s_ref[...], preferred_element_type=jnp.float32)

    @pl.when(k == pl.num_programs(2) - 1)
    def _finalize():
        # bias kept/added in f32; cast to output dtype only at the very end
        out_ref[...] = (acc_ref[...] + b_ref[...]).astype(out_ref.dtype)


def graph_convolution(x, adj, weight, bias=None, *, compute_dtype=jnp.bfloat16):
    """GCN layer: adj @ (x @ weight) + bias.

    compute_dtype (default bf16) is the streaming dtype for x / weight / adj / support;
    accumulation and the bias add are always f32.  Pass jnp.float32 for an f32 path.
    """
    n, f_in = x.shape
    f_out = weight.shape[1]
    assert adj.shape == (n, n)
    assert weight.shape == (f_in, f_out)

    out_dtype = x.dtype
    cdt = jnp.dtype(compute_dtype)
    c_bytes = cdt.itemsize
    o_bytes = jnp.dtype(out_dtype).itemsize

    # --- tile / padding selection -----------------------------------------
    tile_n = _pick_tile(n)                 # row tile (tm) and adj reduction tile (tk)
    n_pad = _round_up(n, tile_n)
    f_in_pad = _round_up(f_in, 128)
    f_out_pad = _round_up(f_out, 128)      # lane-dense output stores

    tm = tk = tile_n
    tn = _divisible_tile(f_out_pad, 256)   # f_out tile (matches v6e/v7x 256-wide MXU)
    tks = _divisible_tile(f_in_pad, 512)   # f_in reduction tile for the support pass

    # --- pad / cast operands (skipped when already matching) ---------------
    x_p = _pad_cast(x, (n_pad, f_in_pad), cdt)
    w_p = _pad_cast(weight, (f_in_pad, f_out_pad), cdt)
    adj_p = _pad_cast(adj, (n_pad, n_pad), cdt)
    b_p = jnp.zeros((1, f_out_pad), jnp.float32)
    if bias is not None:
        b_p = b_p.at[0, :f_out].set(bias.astype(jnp.float32))

    # --- pass 1: support = X @ W -------------------------------------------
    sup_block_bytes = (
        2 * tm * tks * c_bytes      # X tiles (double-buffered)
        + 2 * tks * tn * c_bytes    # W tiles
        + 2 * tm * tn * c_bytes     # support output tiles
        + tm * tn * 4               # f32 accumulator
    )
    support = pl.pallas_call(
        _support_kernel,
        out_shape=jax.ShapeDtypeStruct((n_pad, f_out_pad), cdt),
        grid_spec=pltpu.PrefetchScalarGridSpec(
            num_scalar_prefetch=0,
            grid=(n_pad // tm, f_out_pad // tn, f_in_pad // tks),
            in_specs=[
                pl.BlockSpec((tm, tks), lambda i, j, k: (i, k)),   # X tile
                pl.BlockSpec((tks, tn), lambda i, j, k: (k, j)),   # W tile
            ],
            out_specs=pl.BlockSpec((tm, tn), lambda i, j, k: (i, j)),
            scratch_shapes=[pltpu.VMEM((tm, tn), jnp.float32)],
        ),
        compiler_params=pltpu.CompilerParams(
            dimension_semantics=("parallel", "parallel", "arbitrary"),
            vmem_limit_bytes=_vmem_limit(sup_block_bytes),
        ),
    )(x_p, w_p)

    # --- pass 2: out = adj @ support + bias ---------------------------------
    agg_block_bytes = (
        2 * tm * tk * c_bytes       # adj tiles (double-buffered)
        + 2 * tk * tn * c_bytes     # support tiles
        + 2 * 1 * tn * 4            # bias (tiny; grid-invariant over k)
        + 2 * tm * tn * o_bytes     # output tiles
        + tm * tn * 4               # f32 accumulator
    )
    out = pl.pallas_call(
        _aggregate_kernel,
        out_shape=jax.ShapeDtypeStruct((n_pad, f_out_pad), out_dtype),
        grid_spec=pltpu.PrefetchScalarGridSpec(
            num_scalar_prefetch=0,
            grid=(n_pad // tm, f_out_pad // tn, n_pad // tk),  # reduction axis last
            in_specs=[
                pl.BlockSpec((tm, tk), lambda i, j, k: (i, k)),    # adj tile
                pl.BlockSpec((tk, tn), lambda i, j, k: (k, j)),    # support tile
                pl.BlockSpec((1, tn), lambda i, j, k: (0, j)),     # bias slice (f32)
            ],
            out_specs=pl.BlockSpec((tm, tn), lambda i, j, k: (i, j)),
            scratch_shapes=[pltpu.VMEM((tm, tn), jnp.float32)],    # f32 accumulator
        ),
        compiler_params=pltpu.CompilerParams(
            dimension_semantics=("parallel", "parallel", "arbitrary"),
            vmem_limit_bytes=_vmem_limit(agg_block_bytes),
        ),
    )(adj_p, support, b_p)

    return out[:n, :f_out]


def init_gcn_params(key, in_features, out_features, bias=True, dtype=jnp.float32):
    """Matches PyTorch reset_parameters: uniform(-stdv, stdv), stdv = 1/sqrt(in_features)."""
    stdv = 1.0 / math.sqrt(in_features)
    kw, kb = jax.random.split(key)
    weight = jax.random.uniform(
        kw, (in_features, out_features), dtype=dtype, minval=-stdv, maxval=stdv
    )
    b = None
    if bias:
        b = jax.random.uniform(
            kb, (out_features,), dtype=dtype, minval=-stdv, maxval=stdv
        )
    return weight, b


if __name__ == "__main__":
    key = jax.random.PRNGKey(0)
    k_x, k_adj, k_params = jax.random.split(key, 3)

    # Small but non-aligned shapes so padding + the tiled (rows, f_out, reduction)
    # grids are exercised.
    num_nodes = 200
    in_features = 48
    out_features = 80

    x = jax.random.normal(k_x, (num_nodes, in_features), dtype=jnp.float32)

    # Dense "sparse-like" normalized adjacency (self-loops + row normalization).
    adj_raw = (jax.random.uniform(k_adj, (num_nodes, num_nodes)) > 0.9).astype(jnp.float32)
    adj_raw = adj_raw + jnp.eye(num_nodes, dtype=jnp.float32)
    deg = jnp.sum(adj_raw, axis=1, keepdims=True)
    adj = adj_raw / deg

    weight, bias = init_gcn_params(k_params, in_features, out_features, bias=True)

    ref = adj @ (x @ weight) + bias[None, :]

    # f32 streaming path: tight tolerance vs. reference.
    out_f32 = jax.block_until_ready(
        graph_convolution(x, adj, weight, bias, compute_dtype=jnp.float32)
    )
    assert out_f32.shape == (num_nodes, out_features)
    assert jnp.allclose(out_f32, ref, atol=1e-4, rtol=1e-4)

    # Default bf16 streaming path (f32 accumulation): looser tolerance.
    out_bf16 = jax.block_until_ready(graph_convolution(x, adj, weight, bias))
    assert out_bf16.shape == (num_nodes, out_features)
    assert jnp.allclose(out_bf16, ref, atol=3e-2, rtol=3e-2)

    print("KERNEL_OK")
</pallas_src>

<mosaic_0001>
module attributes {stable_mosaic.version = 11 : i64} {
  func.func @_support_kernel(%arg0: i32, %arg1: i32, %arg2: i32, %arg3: memref<128x128xf32, #tpu.memory_space<vmem>>, %arg4: memref<128x128xf32, #tpu.memory_space<vmem>>, %arg5: memref<128x128xf32, #tpu.memory_space<vmem>>, %arg6: memref<128x128xf32, #tpu.memory_space<vmem>>) attributes {dimension_semantics = [#tpu.dimension_semantics<parallel>, #tpu.dimension_semantics<parallel>, #tpu.dimension_semantics<arbitrary>], iteration_bounds = array<i64: 2, 1, 1>, scalar_prefetch = 0 : i64, scratch_operands = 1 : i64, tpu.core_type = #tpu.core_type<tc>, window_params = [{transform_indices = @transform_0, window_bounds = array<i64: 128, 128>}, {transform_indices = @transform_1, window_bounds = array<i64: 128, 128>}, {transform_indices = @transform_2, window_bounds = array<i64: 128, 128>}]} {
    %c0_i32 = arith.constant 0 : i32
    %0 = arith.cmpi eq, %arg2, %c0_i32 : i32
    %1 = arith.extui %0 : i1 to i32
    %c0_i32_0 = arith.constant 0 : i32
    %2 = arith.cmpi ne, %1, %c0_i32_0 : i32
    scf.if %2 {
      %cst_10 = arith.constant 0.000000e+00 : f32
      %12 = vector.broadcast %cst_10 : f32 to vector<128x128xf32>
      %c0_11 = arith.constant 0 : index
      %c0_12 = arith.constant 0 : index
      %13 = vector.load %arg6[%c0_11, %c0_12] : memref<128x128xf32, #tpu.memory_space<vmem>>, vector<128x128xf32>
      tpu.vector_store %arg6[%c0_11, %c0_12], %12 {strides = array<i32>} : memref<128x128xf32, #tpu.memory_space<vmem>>, vector<128x128xf32>,
    } else {
    }
    %c0 = arith.constant 0 : index
    %c0_1 = arith.constant 0 : index
    %3 = vector.load %arg6[%c0, %c0_1] : memref<128x128xf32, #tpu.memory_space<vmem>>, vector<128x128xf32>
    %c0_2 = arith.constant 0 : index
    %c0_3 = arith.constant 0 : index
    %4 = vector.load %arg3[%c0_2, %c0_3] : memref<128x128xf32, #tpu.memory_space<vmem>>, vector<128x128xf32>
    %c0_4 = arith.constant 0 : index
    %c0_5 = arith.constant 0 : index
    %5 = vector.load %arg4[%c0_4, %c0_5] : memref<128x128xf32, #tpu.memory_space<vmem>>, vector<128x128xf32>
    %cst = arith.constant dense<0.000000e+00> : vector<128x128xf32>
    %6 = tpu.matmul %4, %5, %cst {dimension_numbers = #tpu.dot_dimension_numbers<[1], [0], [0], [1], [0, 0, 1, 1], [], []>} : vector<128x128xf32>, vector<128x128xf32>, vector<128x128xf32> -> vector<128x128xf32>
    %7 = arith.addf %3, %6 : vector<128x128xf32>
    %c0_6 = arith.constant 0 : index
    %c0_7 = arith.constant 0 : index
    %8 = vector.load %arg6[%c0_6, %c0_7] : memref<128x128xf32, #tpu.memory_space<vmem>>, vector<128x128xf32>
    tpu.vector_store %arg6[%c0_6, %c0_7], %7 {strides = array<i32>} : memref<128x128xf32, #tpu.memory_space<vmem>>, vector<128x128xf32>,
    %c0_i32_8 = arith.constant 0 : i32
    %9 = arith.cmpi eq, %arg2, %c0_i32_8 : i32
    %10 = arith.extui %9 : i1 to i32
    %c0_i32_9 = arith.constant 0 : i32
    %11 = arith.cmpi ne, %10, %c0_i32_9 : i32
    scf.if %11 {
      %c0_10 = arith.constant 0 : index
      %c0_11 = arith.constant 0 : index
      %12 = vector.load %arg6[%c0_10, %c0_11] : memref<128x128xf32, #tpu.memory_space<vmem>>, vector<128x128xf32>
      %c0_12 = arith.constant 0 : index
      %c0_13 = arith.constant 0 : index
      %13 = vector.load %arg5[%c0_12, %c0_13] : memref<128x128xf32, #tpu.memory_space<vmem>>, vector<128x128xf32>
      tpu.vector_store %arg5[%c0_12, %c0_13], %12 {strides = array<i32>} : memref<128x128xf32, #tpu.memory_space<vmem>>, vector<128x128xf32>,
    } else {
    }
    return
  }
  func.func @transform_0(%arg0: i32, %arg1: i32, %arg2: i32) -> (i32, i32) {
    %c0_i32 = arith.constant 0 : i32
    return %arg0, %arg2 : i32, i32
  }
  func.func @transform_1(%arg0: i32, %arg1: i32, %arg2: i32) -> (i32, i32) {
    %c0_i32 = arith.constant 0 : i32
    return %arg2, %arg1 : i32, i32
  }
  func.func @transform_2(%arg0: i32, %arg1: i32, %arg2: i32) -> (i32, i32) {
    %c0_i32 = arith.constant 0 : i32
    return %arg0, %arg1 : i32, i32
  }
}

</mosaic_0001>

<bundles_post_ra>
// kernel: tpu_custom_call.1
= control target key start
LH: loop header
LB: loop body
LE: loop exit
PB: predicated region body
PF: predicated region fallthrough
CT: control target
= control target key end

     0   :  { %7 = vsyncpa [#allocation4], 0  ;;  %s1278_s0 = inlined_call_operand.hbm [shape: f32[256,128], index: 0, kind: input, shape index: {}]   ;;  %s1279_s1 = inlined_call_operand.hbm [shape: f32[128,128], index: 1, kind: input, shape index: {}]   ;;  %s1280_s2 = inlined_call_operand.hbm [shape: f32[256,128], index: 2, kind: output, shape index: {}]  }
   0x1   :  { %9 = vsyncpa [#allocation4 + $0x1], 0 }
   0x2   :  { %10 = vsyncpa [#allocation7], 0 }
   0x3   :  { %11 = vsyncpa [#allocation5], 0 }
   0x4   :  { %13 = vsyncpa [#allocation5 + $0x1], 0  ;;  %s1012_s9 = smov 0   ;;  %s1014_s10 = smov 0  }
   0x5   :  { %s1016_s11 = smov 0   ;;  %s1018_s12 = smov 0  }
   0x6   :  { %s1020_s13 = smov 0   ;;  %s1022_s14 = smov 0  }
   0x7 LB: > { %s612_s15 = sadd.s32 4294967295, %s988_s14   ;;  %s613_s16 = sadd.s32 4294967294, %s988_s14   ;;  %s988_s14 = sphi %s1022_s14, %s19_s14   ;;  %s984_s13 = sphi %s1020_s13, %s1304_s13   ;;  %s980_s12 = sphi %s1018_s12, %s1303_s12   ;;  %s976_s11 = sphi %s1016_s11, %s1302_s11   ;;  %s972_s10 = sphi %s1014_s10, %s1301_s10   ;;  %s968_s9 = sphi %s1012_s9, %s1300_s9  }
   0x8   : > { %p60_p0 = scmp.ne.s32.totalorder %s972_s10, %s968_s9  ;;  %p1046_p1 = scmp.eq.s32.totalorder %s612_s15, 0 }
   0x9   : > { %p1050_p2 = scmp.eq.s32.totalorder %s612_s15, 1  ;;  %p120_p3 = scmp.eq.s32.totalorder %s613_s16, 1 }
   0xa   : > { %s1285_s17 = scalar_select %p1046_p1, 1, 0 }
   0xb   : > { %s1286_s18 = scalar_select %p1050_p2, 1, 0 }
   0xc   : > { %p1056_p4 = por %p1046_p1, %p60_p0  ;;  %p614_p5 = scmp.ge.s32.totalorder %s988_s14, 1 }
   0xd   : > { %p1061_p6 = por %p120_p3, %p60_p0  ;;  %p127_p7 = scmp.lt.s32.totalorder %s988_s14, 3 }
   0xe   : > { %s1287_s19 = scalar_select %p1056_p4, 1, 0 }
   0xf   : > { %s1288_s20 = scalar_select %p1061_p6, 1, 0 }
  0x10   : > { %p1066_p8 = pnand %p614_p5, %p127_p7  ;;  %s990_s22 = smov [#allocation6]  }
  0x11   : > { %s143_s23 = sshll.u32 %s990_s22, 4  ;;  %s38_s25 = sadd.s32 1, %s984_s13  ;;  %s144_s23 = int_to_ptr.vmem [resolvable:$true] %s143_s23 }
  0x12   : > { %s1289_s21 = scalar_select %p1066_p8, 1, 0 }
  0x13   : > { %p775_p9 = pneg %p1066_p8  ;;  %s844_s28 = scalar_lea.hbm %s1279_s1, 2048 }
  0x14   : > { %p845_p12 = scmp.ne.s32.totalorder %s1279_s1, %s844_s28  ;;  %p851_p5 = scmp.lt.u32.totalorder %s844_s28, %s1279_s1 }
  0x15   : > { %p1075_p11 = pnand %p775_p9, %p1046_p1 }
  0x17   : > { %p846_p13 = pneg %p1075_p11 }
  0x19   : > { %p847_p0 = pnand %p846_p13, %p845_p12 }
  0x1b   : > { %p848_p3 = pneg %p847_p0 }
  0x1d   : > { %p853_p7 = pnand %p851_p5, %p848_p3 }
  0x1f   : > { %856 = shalt.err (!%p853_p7)
}
  0x20   : > { %s857_s5 = scalar_lea.vmem %s144_s23, 2048  ;;  %p865_p1 = scmp.lt.s32.totalorder %s144_s23, %s144_s23 }
  0x21   : > { %p858_p9 = scmp.ne.s32.totalorder %s144_s23, %s857_s5  ;;  %p866_p4 = scmp.lt.s32.totalorder %s857_s5, %s857_s5 }
  0x23   : > { %p860_p10 = pnand %p858_p9, %p846_p13  ;;  %p867_p8 = por %p866_p4, %p865_p1 }
  0x25   : > { %p861_p6 = pneg %p860_p10 }
  0x27   : > { %p868_p2 = pnand %p867_p8, %p861_p6 }
  0x29   : > { %871 = shalt.err (!%p868_p2)
}
  0x2a   : > { %s991_s6 = smov 128   ;;  %s992_s7 = smov 8  }
  0x2b   : > { %778 = dma.hbm_to_vmem [thread:$0]  (!%p1075_p11), %s1279_s1, 2048, %s144_s23, [#allocation7], %s991_s6, %s991_s6, %s992_s7  }
  0x2c   : > { %p40_p1 = scmp.ge.s32.totalorder %s38_s25, 2  ;;  %s47_s16 = sadd.s32 1, %s976_s11 }
  0x2d   : > { %p54_p2 = scmp.ne.s32.totalorder %s976_s11, %s972_s10  ;;  %p55_p4 = scmp.eq.s32.totalorder %s988_s14, 0 }
  0x2e   : > { %s1306_s25 = smov (%p40_p1, %s38_s25), 0  ;;  %p1292_p8 = scmp.ne.s32.totalorder %s1286_s18, 0 }
  0x2f   : > { %p1105_p6 = por %p55_p4, %p54_p2  ;;  %s42_s26 = ssub.s32 %s984_s13, %s1306_s25 }
  0x30   : > { %p1111_p10 = por %p1292_p8, %p54_p2  ;;  %p788_p12 = scmp.lt.s32.totalorder %s988_s14, 2 }
  0x31   : > { %p45_p11 = scmp.eq.s32.totalorder %s42_s26, 0  ;;  %s157_s23 = sand.u32 1, %s976_s11  }
  0x32   : > { %s617_s27 = sshll.u32 %s157_s23, 7  ;;  %s629_s29 = sshll.u32 %s984_s13, 11 }
  0x33   : > { %s1120_s28 = scalar_select %p45_p11, %s976_s11, %s47_s16  }
  0x34   : > { %s1126_s4 = scalar_lea.hbm %s1278_s0, %s629_s29  ;;  %s161_s18 = scalar_lea.vmem [#allocation3], %s617_s27 }
  0x35   : > { %s169_s5 = sshll.u32 %s161_s18, 4  ;;  %p1132_p13 = pnand %p788_p12, %p1105_p6  ;;  %s1128_s5 = int_to_ptr.vmem [resolvable:$true] %s169_s5 }
  0x36   : > { %s1136_s15 = scalar_lea.sflag [#allocation4], %s157_s23  ;;  %s872_s16 = scalar_lea.hbm %s1126_s4, 2048 }
  0x37   : > { %p873_p0 = scmp.ne.s32.totalorder %s1126_s4, %s872_s16  ;;  %p874_p3 = pneg %p1132_p13 }
  0x38   : > { %s877_s22 = scalar_lea.hbm %s1278_s0, 4096  ;;  %p878_p9 = scmp.lt.u32.totalorder %s1126_s4, %s1278_s0 }
  0x39   : > { %p875_p5 = pnand %p874_p3, %p873_p0  ;;  %p879_p1 = scmp.lt.u32.totalorder %s877_s22, %s872_s16 }
  0x3a   : > { %p881_p4 = scmp.lt.u32.totalorder %s872_s16, %s1126_s4 }
  0x3b   : > { %p876_p7 = pneg %p875_p5  ;;  %p880_p2 = por %p879_p1, %p878_p9 }
  0x3d   : > { %p882_p6 = por %p881_p4, %p880_p2 }
  0x3f   : > { %p883_p8 = pnand %p882_p6, %p876_p7 }
  0x41   : > { %886 = shalt.err (!%p883_p8)
}
  0x42   : > { %s887_s23 = scalar_lea.vmem %s1128_s5, 2048  ;;  %s993_s3 = smov [#allocation3]  }
  0x43   : > { %p888_p12 = scmp.ne.s32.totalorder %s1128_s5, %s887_s23  ;;  %s892_s18 = sshll.u32 %s993_s3, 4  ;;  %s893_s18 = int_to_ptr.vmem [resolvable:$false] %s892_s18 }
  0x44   : > { %s894_s26 = scalar_lea.vmem %s893_s18, 4096  ;;  %p895_p5 = scmp.lt.s32.totalorder %s1128_s5, %s893_s18 }
  0x45   : > { %p890_p11 = pnand %p888_p12, %p874_p3  ;;  %p896_p9 = scmp.lt.s32.totalorder %s894_s26, %s887_s23 }
  0x47   : > { %p891_p0 = pneg %p890_p11  ;;  %p897_p1 = por %p896_p9, %p895_p5 }
  0x49   : > { %p898_p2 = pnand %p897_p1, %p891_p0 }
  0x4b   : > { %901 = shalt.err (!%p898_p2)
}
  0x4c   : > { %782 = dma.hbm_to_vmem [thread:$0]  (!%p1132_p13), %s1126_s4, 2048, %s1128_s5, %s1136_s15, %s991_s6, %s991_s6, %s992_s7  }
  0x4d   : > { %p1295_p3 = scmp.ne.s32.totalorder %s1289_s21, 0 }
  0x4e   : > { %s1170_s16 = sand.u32 (!%p1295_p3), 1, %s972_s10   ;;  %p1296_p7 = scmp.ne.s32.totalorder (!%p1295_p3), %s1287_s19, 0 }
  0x4f   : > { %181 = sbr.rel (%p1295_p3) target bundleno = 365 (0x16d), region = 28  ;;  %s621_s27 = sshll.u32 (!%p1295_p3), %s1170_s16, 7 }
  0x50   : > { %s184_s22 = scalar_lea.sflag (!%p1295_p3), [#allocation4], %s1170_s16  ;;  %s1176_s8 = scalar_lea.vmem (!%p1295_p3), [#allocation3], %s621_s27 }
  0x56   : > { %955 = dma.done.wait (%p1296_p7), %s184_s22, 2048  }
  0x57   : > { %957 = vsyncadd (%p1296_p7), %s184_s22, 4294965248  ;;  %p1297_p13 = scmp.ne.s32.totalorder %s1285_s17, 0 }
  0x59   : > { %959 = dma.done.wait (%p1297_p13), [#allocation7], 2048  }
  0x5a   : > { %961 = vsyncadd (%p1297_p13), [#allocation7], 4294965248  ;;  %v267_v0 = vld [vmem:[#allocation6] sm:$0xff]  ;;  %v268_v1 = vld [vmem:[#allocation6 + $0x8] sm:$0xff]  ;;  %s1204_s17 = scalar_lea.vmem [#allocation8], %s621_s27  ;;  %s630_s19 = sshll.u32 %s980_s12, 11 }
  0x5b   : > { %v269_v2 = vld [vmem:[#allocation6 + $0x10] sm:$0xff]  ;;  %v719_v3 = vpack.c.bf16 %v268_v1, %v267_v0  ;;  %v270_v4 = vld [vmem:[#allocation6 + $0x18] sm:$0xff]  ;;  %v271_v6 = vld [vmem:[#allocation6 + $0x20] sm:$0xff]  ;;  %s510_s21 = sshll.u32 %s1204_s17, 4  ;;  %s1223_s4 = scalar_lea.hbm %s1280_s2, %s630_s19  ;;  %s1225_s21 = int_to_ptr.vmem [resolvable:$true] %s510_s21 }
  0x5c   : > { %v723_v5 = vpack.c.bf16 %v270_v4, %v269_v2  ;;  %v272_v7 = vld [vmem:[#allocation6 + $0x28] sm:$0xff]  ;;  %v251_v9 = vld [vmem:[%s1176_s8] sm:$0xff]  ;;  %v273_v11 = vld [vmem:[#allocation6 + $0x30] sm:$0xff]  ;;  %s496_s12 = scalar_lea.sflag [#allocation5], %s1170_s16  ;;  %s902_s5 = scalar_lea.vmem %s1225_s21, 2048 }
  0x5d   : > { %720 = vmatprep.subr.bf16.mxu0 %v719_v3  ;;  %751 = vmatprep.subr.bf16.mxu1 %v719_v3  ;;  %v727_v8 = vpack.c.bf16 %v272_v7, %v271_v6  ;;  %v259_v10 = vld [vmem:[%s1176_s8 + $0x40] sm:$0xff]  ;;  %v274_v12 = vld [vmem:[#allocation6 + $0x38] sm:$0xff]  ;;  %v276_v15 = vld [vmem:[#allocation6 + $0x48] sm:$0xff]  ;;  %p903_p4 = scmp.ne.s32.totalorder %s1225_s21, %s902_s5  ;;  %s994_s15 = smov [#allocation8]  }
  0x5e   : > { %722 = vmatpush3.bf16.msra.mxu0 %v719_v3  ;;  %759 = vmatpush3.bf16.msra.mxu1 %v719_v3  ;;  %v731_v13 = vpack.c.bf16 %v274_v12, %v273_v11  ;;  %v275_v14 = vld [vmem:[#allocation6 + $0x40] sm:$0xff]  ;;  %v277_v17 = vld [vmem:[#allocation6 + $0x50] sm:$0xff]  ;;  %v278_v18 = vld [vmem:[#allocation6 + $0x58] sm:$0xff]  ;;  %s906_s29 = sshll.u32 %s994_s15, 4  ;;  %s907_s29 = int_to_ptr.vmem [resolvable:$false] %s906_s29 }
  0x5f   : > { %724 = vmatprep.subr.bf16.mxu0 %v723_v5  ;;  %752 = vmatprep.subr.bf16.mxu1 %v723_v5  ;;  %v735_v16 = vpack.c.bf16 %v276_v15, %v275_v14  ;;  %v739_v19 = vpack.c.bf16 %v278_v18, %v277_v17  ;;  %v279_v20 = vld [vmem:[#allocation6 + $0x60] sm:$0xff]  ;;  %v280_v21 = vld [vmem:[#allocation6 + $0x68] sm:$0xff]  ;;  %v281_v23 = vld [vmem:[#allocation6 + $0x70] sm:$0xff]  ;;  %p904_p6 = pnand %p903_p4, %p1111_p10  ;;  %s908_s30 = scalar_lea.vmem %s907_s29, 4096 }
  0x60   : > { %695 = vmatprep.mubr.f32.mxu0 %v251_v9  ;;  %707 = vmatprep.mubr.f32.mxu1 %v259_v10  ;;  %v743_v22 = vpack.c.bf16 %v280_v21, %v279_v20  ;;  %v282_v24 = vld [vmem:[#allocation6 + $0x78] sm:$0xff]  ;;  %v252_v26 = vld [vmem:[%s1176_s8 + $0x8] sm:$0xff]  ;;  %v253_v28 = vld [vmem:[%s1176_s8 + $0x10] sm:$0xff]  ;;  %p909_p12 = scmp.lt.s32.totalorder %s1225_s21, %s907_s29  ;;  %p910_p11 = scmp.lt.s32.totalorder %s908_s30, %s902_s5 }
  0x61   : > { %v747_v25 = vpack.c.bf16 %v282_v24, %v281_v23  ;;  %v260_v27 = vld [vmem:[%s1176_s8 + $0x48] sm:$0xff]  ;;  %v261_v29 = vld [vmem:[%s1176_s8 + $0x50] sm:$0xff]  ;;  %v254_v30 = vld [vmem:[%s1176_s8 + $0x18] sm:$0xff]  ;;  %p905_p8 = pneg %p904_p6 }
  0x62   : > { %726 = vmatpush3.bf16.msra.mxu0 %v723_v5  ;;  %760 = vmatpush3.bf16.msra.mxu1 %v723_v5  ;;  %v262_v31 = vld [vmem:[%s1176_s8 + $0x58] sm:$0xff]  ;;  %v255_v32 = vld [vmem:[%s1176_s8 + $0x20] sm:$0xff]  ;;  %v256_v34 = vld [vmem:[%s1176_s8 + $0x28] sm:$0xff]  ;;  %p911_p0 = por %p910_p11, %p909_p12 }
  0x63   : > { %728 = vmatprep.subr.bf16.mxu0 %v727_v8  ;;  %753 = vmatprep.subr.bf16.mxu1 %v727_v8  ;;  %v263_v33 = vld [vmem:[%s1176_s8 + $0x60] sm:$0xff]  ;;  %v264_v35 = vld [vmem:[%s1176_s8 + $0x68] sm:$0xff]  ;;  %v257_v36 = vld [vmem:[%s1176_s8 + $0x30] sm:$0xff] }
  0x64   : > { %v265_v37 = vld [vmem:[%s1176_s8 + $0x70] sm:$0xff]  ;;  %v258_v38 = vld [vmem:[%s1176_s8 + $0x38] sm:$0xff]  ;;  %p912_p5 = pnand %p911_p0, %p905_p8 }
  0x65   : > { %v266_v39 = vld [vmem:[%s1176_s8 + $0x78] sm:$0xff] }
  0x66   : > { %730 = vmatpush3.bf16.msra.mxu0 %v727_v8  ;;  %761 = vmatpush3.bf16.msra.mxu1 %v727_v8 }
  0x67   : > { %732 = vmatprep.subr.bf16.mxu0 %v731_v13  ;;  %754 = vmatprep.subr.bf16.mxu1 %v731_v13 }
  0x6a   : > { %734 = vmatpush3.bf16.msra.mxu0 %v731_v13  ;;  %762 = vmatpush3.bf16.msra.mxu1 %v731_v13 }
  0x6b   : > { %736 = vmatprep.subr.bf16.mxu0 %v735_v16  ;;  %755 = vmatprep.subr.bf16.mxu1 %v735_v16 }
  0x6e   : > { %738 = vmatpush3.bf16.msra.mxu0 %v735_v16  ;;  %763 = vmatpush3.bf16.msra.mxu1 %v735_v16 }
  0x6f   : > { %740 = vmatprep.subr.bf16.mxu0 %v739_v19  ;;  %756 = vmatprep.subr.bf16.mxu1 %v739_v19 }
  0x72   : > { %742 = vmatpush3.bf16.msra.mxu0 %v739_v19  ;;  %764 = vmatpush3.bf16.msra.mxu1 %v739_v19 }
  0x73   : > { %744 = vmatprep.subr.bf16.mxu0 %v743_v22  ;;  %757 = vmatprep.subr.bf16.mxu1 %v743_v22 }
  0x76   : > { %746 = vmatpush3.bf16.msra.mxu0 %v743_v22  ;;  %765 = vmatpush3.bf16.msra.mxu1 %v743_v22 }
  0x77   : > { %748 = vmatprep.subr.bf16.mxu0 %v747_v25  ;;  %758 = vmatprep.subr.bf16.mxu1 %v747_v25 }
  0x7a   : > { %750 = vmatpush3.bf16.msra.mxu0 %v747_v25  ;;  %766 = vmatpush3.bf16.msra.mxu1 %v747_v25 }
  0x7d   : > { %696 = vmatmul.mubr.f32.vlgmr.msra.gmra.mrb[0].mxu0 %v252_v26  ;;  %708 = vmatmul.mubr.f32.vlgmr.msra.gmra.mrb[0].mxu1 %v260_v27 }
  0x7e   : > { %698 = vmatprep.mubr.f32.mxu0 %v253_v28  ;;  %710 = vmatprep.mubr.f32.mxu1 %v261_v29 }
  0x81   : > { %699 = vmatmul.mubr.f32.gmra.mrb[2].mxu0 %v254_v30  ;;  %711 = vmatmul.mubr.f32.gmra.mrb[2].mxu1 %v262_v31 }
  0x82   : > { %701 = vmatprep.mubr.f32.mxu0 %v255_v32  ;;  %713 = vmatprep.mubr.f32.mxu1 %v263_v33 }
  0x85   : > { %702 = vmatmul.mubr.f32.gmra.mrb[4].mxu0 %v256_v34  ;;  %714 = vmatmul.mubr.f32.gmra.mrb[4].mxu1 %v264_v35 }
  0x86   : > { %704 = vmatprep.mubr.f32.mxu0 %v257_v36  ;;  %716 = vmatprep.mubr.f32.mxu1 %v265_v37 }
  0x89   : > { %705 = vmatmul.mubr.f32.gmra.mrb[6].mxu0 %v258_v38  ;;  %717 = vmatmul.mubr.f32.gmra.mrb[6].mxu1 %v266_v39 }
 0x150   : > { %v697_v40 = vpop.f32.mrb[0].mxu0  ;;  %v709_v41 = vpop.f32.mrb[0].mxu1 }
 0x151   : > { %480 = vst [vmem:[%s1204_s17 + $0x8] sm:$0xff] %v697_v40  ;;  %488 = vst [vmem:[%s1204_s17 + $0x48] sm:$0xff] %v709_v41  ;;  %v349_v42 = vpop.f32.mrb[1].mxu0  ;;  %v389_v43 = vpop.f32.mrb[1].mxu1 }
 0x152   : > { %479 = vst [vmem:[%s1204_s17] sm:$0xff] %v349_v42  ;;  %487 = vst [vmem:[%s1204_s17 + $0x40] sm:$0xff] %v389_v43 }
 0x154   : > { %v700_v44 = vpop.f32.mrb[2].mxu0  ;;  %v712_v45 = vpop.f32.mrb[2].mxu1 }
 0x155   : > { %482 = vst [vmem:[%s1204_s17 + $0x18] sm:$0xff] %v700_v44  ;;  %490 = vst [vmem:[%s1204_s17 + $0x58] sm:$0xff] %v712_v45  ;;  %v359_v46 = vpop.f32.mrb[3].mxu0  ;;  %v399_v47 = vpop.f32.mrb[3].mxu1 }
 0x156   : > { %481 = vst [vmem:[%s1204_s17 + $0x10] sm:$0xff] %v359_v46  ;;  %489 = vst [vmem:[%s1204_s17 + $0x50] sm:$0xff] %v399_v47 }
 0x158   : > { %v703_v48 = vpop.f32.mrb[4].mxu0  ;;  %v715_v49 = vpop.f32.mrb[4].mxu1 }
 0x159   : > { %484 = vst [vmem:[%s1204_s17 + $0x28] sm:$0xff] %v703_v48  ;;  %492 = vst [vmem:[%s1204_s17 + $0x68] sm:$0xff] %v715_v49  ;;  %v369_v50 = vpop.f32.mrb[5].mxu0  ;;  %v409_v51 = vpop.f32.mrb[5].mxu1 }
 0x15a   : > { %483 = vst [vmem:[%s1204_s17 + $0x20] sm:$0xff] %v369_v50  ;;  %491 = vst [vmem:[%s1204_s17 + $0x60] sm:$0xff] %v409_v51 }
 0x15c   : > { %v706_v52 = vpop.f32.mrb[6].mxu0  ;;  %v718_v53 = vpop.f32.mrb[6].mxu1 }
 0x15d   : > { %486 = vst [vmem:[%s1204_s17 + $0x38] sm:$0xff] %v706_v52  ;;  %494 = vst [vmem:[%s1204_s17 + $0x78] sm:$0xff] %v718_v53  ;;  %v379_v54 = vpop.f32.mrb[7].mxu0  ;;  %v419_v55 = vpop.f32.mrb[7].mxu1 }
 0x15e   : > { %485 = vst [vmem:[%s1204_s17 + $0x30] sm:$0xff] %v379_v54  ;;  %493 = vst [vmem:[%s1204_s17 + $0x70] sm:$0xff] %v419_v55 }
 0x15f   : > { %915 = shalt.err (!%p912_p5)
}
 0x160   : > { %s916_s23 = scalar_lea.hbm %s1223_s4, 2048  ;;  %s920_s26 = scalar_lea.hbm %s1280_s2, 4096 }
 0x161   : > { %p917_p9 = scmp.ne.s32.totalorder %s1223_s4, %s916_s23  ;;  %p921_p3 = scmp.lt.u32.totalorder %s1223_s4, %s1280_s2 }
 0x162   : > { %p922_p7 = scmp.lt.u32.totalorder %s920_s26, %s916_s23  ;;  %p924_p4 = scmp.lt.u32.totalorder %s916_s23, %s1223_s4 }
 0x163   : > { %p918_p1 = pnand %p917_p9, %p1111_p10 }
 0x164   : > { %p923_p13 = por %p922_p7, %p921_p3 }
 0x165   : > { %p919_p2 = pneg %p918_p1 }
 0x166   : > { %p925_p6 = por %p924_p4, %p923_p13 }
 0x168   : > { %p926_p8 = pnand %p925_p6, %p919_p2 }
 0x16a   : > { %929 = shalt.err (!%p926_p8)
}
 0x16b   : > { %s995_s8 = smov 128   ;;  %s996_s17 = smov 8  }
 0x16c   : > { %773 = dma.vmem_to_hbm [thread:$0]  (%p1111_p10), %s1225_s21, 2048, %s1223_s4, %s496_s12, %s995_s8, %s995_s8, %s996_s17  }
 0x16d PF: > { %s525_s19 = sand.u32 1, %s968_s9   ;;  %p1298_p12 = scmp.ne.s32.totalorder %s1288_s20, 0 }
 0x16e   : > { %p1299_p11 = scmp.ge.s32.totalorder %s988_s14, 2  ;;  %s526_s6 = scalar_lea.sflag [#allocation5], %s525_s19 }
 0x170   : > { %p784_p0 = pnand %p1299_p11, %p1298_p12 }
 0x172   : > { %963 = dma.done.wait (!%p784_p0), %s526_s6, 2048  }
 0x173   : > { %965 = vsyncadd (!%p784_p0), %s526_s6, 4294965248  ;;  %s19_s14 = sadd.s32 1, %s988_s14   ;;  %s1300_s9 = smov %s972_s10 }
 0x174   : > { %p16_p5 = scmp.ge.s32.totalorder %s19_s14, 4   ;;  %s1301_s10 = smov %s976_s11 }
 0x175   : > { %s1302_s11 = smov %s1120_s28  ;;  %s1303_s12 = smov %s984_s13 }
 0x176   : > { %s1304_s13 = smov %s1306_s25  ;;  %18 = sbr.rel (!%p16_p5) target bundleno = 7 (0x7), region = 86 }
 0x17d   :  { %531 = vsyncpa [#allocation4], 1 }
 0x17e   :  { %533 = vsyncpa [#allocation4 + $0x1], 1 }
 0x17f   :  { %534 = vsyncpa [#allocation7], 1 }
 0x180   :  { %535 = vsyncpa [#allocation5], 1 }
 0x181   :  { %537 = vsyncpa [#allocation5 + $0x1], 1 }

</bundles_post_ra>
